<compile_context>
chip_gen: v7x
topology: tpu7x:2x2x1
jax: 0.10.0
libtpu: 0.0.40
codegen_flags: <defaults>
</compile_context>

<pallas_src>
import functools
import math

import jax
import jax.numpy as jnp
from jax.experimental import pallas as pl
from jax.experimental.pallas import tpu as pltpu


def _mha_kernel(x_ref, wq_ref, bq_ref, wkv_ref, bkv_ref, wo_ref, bo_ref,
                o_ref, k_sc, v_sc, av_sc,
                *, heads: int, attn_ch: int, width: int, tq: int):
    """Grid = (batch, query_tile).  The q axis must stay sequential ('arbitrary')
    because K/V scratch is written at q == 0 and reused by later q-tiles."""
    q_idx = pl.program_id(1)
    bf16 = jnp.bfloat16

    # ---- once per batch element: fused full-width K/V projection (all heads) ----
    # The softmax scale is folded into the K columns of wkv/bkv (and into wq/bq).
    @pl.when(q_idx == 0)
    def _():
        x_full = x_ref[0]                                        # (n_ctx, width) bf16
        kv = (jnp.dot(x_full, wkv_ref[...],
                      preferred_element_type=jnp.float32) + bkv_ref[...])
        k_sc[...] = kv[:, :width].astype(bf16)                   # (n_ctx, width), lane-dense
        v_sc[...] = kv[:, width:].astype(bf16)                   # (n_ctx, width), lane-dense

    # ---- per q-tile: fused full-width Q projection (all heads at once) ----
    row0 = pl.multiple_of(q_idx * tq, 8)
    xq = x_ref[0, pl.ds(row0, tq), :]                            # (tq, width) bf16
    q_full = (jnp.dot(xq, wq_ref[...], preferred_element_type=jnp.float32)
              + bq_ref[...]).astype(bf16)                        # (tq, width)

    # ---- per-head attention (static unroll => static lane slices only) ----
    for hh in range(heads):
        c0 = hh * attn_ch
        q_h = q_full[:, c0:c0 + attn_ch]                         # (tq, ch)     bf16
        k_h = k_sc[:, c0:c0 + attn_ch]                           # (n_ctx, ch)  bf16
        v_h = v_sc[:, c0:c0 + attn_ch]                           # (n_ctx, ch)  bf16

        # scores: contract attn_ch against attn_ch (NT matmul, no K transpose)
        s = jax.lax.dot_general(q_h, k_h, (((1,), (1,)), ((), ())),
                                preferred_element_type=jnp.float32)   # (tq, n_ctx)
        m = jnp.max(s, axis=-1, keepdims=True)                   # f32 max
        p = jnp.exp((s - m).astype(bf16))                        # bf16 exp (EUP)
        l = jnp.sum(p, axis=-1, keepdims=True, dtype=jnp.float32)  # f32 denominator

        pv = jnp.dot(p, v_h, preferred_element_type=jnp.float32)    # (tq, ch)
        # deferred softmax normalization: scale the small PV result, not p.
        av_sc[:, c0:c0 + attn_ch] = (pv * pl.reciprocal(l, approx=True)).astype(bf16)

    # ---- single full-width c_proj matmul ----
    o_ref[0] = (jnp.dot(av_sc[...], wo_ref[...],
                        preferred_element_type=jnp.float32)
                + bo_ref[...]).astype(o_ref.dtype)


def prepare_mha_params(w_qkv, b_qkv, w_proj, b_proj, *, heads: int):
    """One-time weight re-layout, scale folding and bf16 casts.

    Hoisted out of the per-forward path so each forward pays no HBM passes over
    the weight tensors.  w_qkv: (width, 3*width) with PyTorch per-head
    interleaved q/k/v columns; w_proj: (width, width); biases row vectors.
    """
    width = w_qkv.shape[0]
    assert w_qkv.shape == (width, 3 * width)
    assert width % heads == 0
    attn_ch = width // heads
    scale = 1.0 / math.sqrt(math.sqrt(attn_ch))

    w3 = w_qkv.reshape(width, heads, 3, attn_ch)
    b3 = b_qkv.reshape(heads, 3, attn_ch)
    # head-major, de-interleaved full-width slabs (scale folded into q and k)
    wq = (w3[:, :, 0, :] * scale).reshape(width, width)
    wk = (w3[:, :, 1, :] * scale).reshape(width, width)
    wv = w3[:, :, 2, :].reshape(width, width)
    bq = (b3[:, 0, :] * scale).reshape(1, width)
    bk = (b3[:, 1, :] * scale).reshape(1, width)
    bv = b3[:, 2, :].reshape(1, width)

    wkv = jnp.concatenate([wk, wv], axis=1)                      # (width, 2*width)
    bkv = jnp.concatenate([bk, bv], axis=1)                      # (1, 2*width)

    bf16 = jnp.bfloat16
    return dict(
        wq=wq.astype(bf16), bq=bq.astype(jnp.float32),
        wkv=wkv.astype(bf16), bkv=bkv.astype(jnp.float32),
        wo=w_proj.reshape(width, width).astype(bf16),
        bo=b_proj.reshape(1, width).astype(jnp.float32),
        heads=heads, width=width, attn_ch=attn_ch,
    )


def _pick_tq(n_ctx: int, width: int, vmem_capacity: int) -> int:
    """Largest q-tile that keeps the live (tq, n_ctx) score/prob matrices small
    and satisfies the (8, 128) block constraint (or falls back to the full seq)."""
    if width % 128 != 0:
        return n_ctx                       # out block must equal full array dims
    for cand in (512, 256, 128, 64, 32, 16, 8):
        if cand <= n_ctx and n_ctx % cand == 0:
            if cand * n_ctx * 6 <= vmem_capacity // 4:
                return cand
    return 8 if n_ctx % 8 == 0 else n_ctx


def multihead_attention_fwd(x, params, *, tq=None):
    bs, n_ctx, width = x.shape
    heads, attn_ch = params["heads"], params["attn_ch"]
    assert width == params["width"]

    try:
        vmem_capacity = int(pltpu.get_tpu_info().vmem_capacity_bytes)
    except Exception:
        vmem_capacity = 64 * 2**20         # conservative (v7x per-core size)

    if tq is None:
        tq = _pick_tq(n_ctx, width, vmem_capacity)
    assert n_ctx % tq == 0
    n_q = n_ctx // tq

    x_bf = x.astype(jnp.bfloat16)
    kernel = functools.partial(_mha_kernel, heads=heads, attn_ch=attn_ch,
                               width=width, tq=tq)

    # Rough VMEM budget (Pallas double-buffers input/output blocks).
    est = (2 * n_ctx * width * 2                     # x block (bf16) x2
           + 2 * 4 * width * width * 2               # wq + wkv + wo (bf16) x2
           + 2 * 4 * width * 4                       # biases (f32) x2
           + 2 * n_ctx * width * 2                   # K / V scratch (bf16)
           + tq * width * 2                          # av scratch (bf16)
           + 2 * tq * width * x.dtype.itemsize       # out block x2
           + n_ctx * 2 * width * 4                   # KV projection f32 temporary
           + tq * n_ctx * 8                          # score / prob temporaries
           + 4 * tq * width * 4)
    vmem_limit = int(min(max(2 * est, 32 * 2**20), int(0.85 * vmem_capacity)))

    cost = pl.CostEstimate(
        flops=int(8 * bs * n_ctx * width * width
                  + 4 * bs * heads * n_ctx * n_ctx * attn_ch),
        transcendentals=int(bs * heads * n_ctx * n_ctx),
        bytes_accessed=int(2 * bs * n_ctx * width * 2
                           + bs * n_ctx * width * x.dtype.itemsize
                           + 4 * width * width * 2),
    )

    return pl.pallas_call(
        kernel,
        out_shape=jax.ShapeDtypeStruct((bs, n_ctx, width), x.dtype),
        grid_spec=pltpu.PrefetchScalarGridSpec(
            num_scalar_prefetch=0,
            grid=(bs, n_q),
            in_specs=[
                pl.BlockSpec((1, n_ctx, width), lambda b, q: (b, 0, 0)),
                pl.BlockSpec((width, width), lambda b, q: (0, 0)),       # wq
                pl.BlockSpec((1, width), lambda b, q: (0, 0)),           # bq
                pl.BlockSpec((width, 2 * width), lambda b, q: (0, 0)),   # wkv
                pl.BlockSpec((1, 2 * width), lambda b, q: (0, 0)),       # bkv
                pl.BlockSpec((width, width), lambda b, q: (0, 0)),       # wo
                pl.BlockSpec((1, width), lambda b, q: (0, 0)),           # bo
            ],
            out_specs=pl.BlockSpec((1, tq, width), lambda b, q: (b, q, 0)),
            scratch_shapes=[
                pltpu.VMEM((n_ctx, width), jnp.bfloat16),   # K (scale folded), lane-dense
                pltpu.VMEM((n_ctx, width), jnp.bfloat16),   # V, lane-dense
                pltpu.VMEM((tq, width), jnp.bfloat16),      # per-head attention outputs
            ],
        ),
        compiler_params=pltpu.CompilerParams(
            # q axis stays 'arbitrary': K/V scratch written at q==0 is reused later.
            dimension_semantics=("parallel", "arbitrary"),
            vmem_limit_bytes=vmem_limit,
        ),
        cost_estimate=cost,
    )(x_bf, params["wq"], params["bq"], params["wkv"], params["bkv"],
      params["wo"], params["bo"])


def multihead_attention(x, w_qkv, b_qkv, w_proj, b_proj, *, heads: int, tq=None):
    """Convenience wrapper: prepare params + forward (prefer calling prepare once)."""
    params = prepare_mha_params(w_qkv, b_qkv, w_proj, b_proj, heads=heads)
    return multihead_attention_fwd(x, params, tq=tq)


def multihead_attention_ref(x, w_qkv, b_qkv, w_proj, b_proj, *, heads: int):
    """Pure-JAX f32 reference mirroring the PyTorch module semantics."""
    bs, n_ctx, width = x.shape
    attn_ch = width // heads
    scale = 1.0 / math.sqrt(math.sqrt(attn_ch))

    qkv = x @ w_qkv + b_qkv                                      # (bs, n_ctx, 3*width)
    qkv = qkv.reshape(bs, n_ctx, heads, 3 * attn_ch)
    q, k, v = (qkv[..., :attn_ch], qkv[..., attn_ch:2 * attn_ch],
               qkv[..., 2 * attn_ch:])
    w = jnp.einsum('bthc,bshc->bhts', q * scale, k * scale)
    w = jax.nn.softmax(w.astype(jnp.float32), axis=-1).astype(w.dtype)
    out = jnp.einsum('bhts,bshc->bthc', w, v).reshape(bs, n_ctx, width)
    return out @ w_proj + b_proj


if __name__ == "__main__":
    # Small shapes consistent with the module: batch=2, n_ctx=8, width=32, heads=4.
    bs, n_ctx, width, heads = 2, 8, 32, 4

    key = jax.random.PRNGKey(0)
    kx, k1, k2, k3, k4 = jax.random.split(key, 5)

    x = jax.random.normal(kx, (bs, n_ctx, width), dtype=jnp.float32)

    # Deterministic "Linear"-style init (uniform, bound = 1/sqrt(fan_in)).
    bnd = 1.0 / math.sqrt(width)
    w_qkv = jax.random.uniform(k1, (width, 3 * width), jnp.float32, -bnd, bnd)
    b_qkv = jax.random.uniform(k2, (1, 3 * width), jnp.float32, -bnd, bnd)
    w_proj = jax.random.uniform(k3, (width, width), jnp.float32, -bnd, bnd)
    b_proj = jax.random.uniform(k4, (1, width), jnp.float32, -bnd, bnd)

    params = prepare_mha_params(w_qkv, b_qkv, w_proj, b_proj, heads=heads)
    out = multihead_attention_fwd(x, params)
    out = jax.block_until_ready(out)

    ref = multihead_attention_ref(x, w_qkv, b_qkv, w_proj, b_proj, heads=heads)
    assert out.shape == (bs, n_ctx, width)
    # bf16 matmul/exp operands + approx reciprocal => compare loosely vs f32 reference.
    assert jnp.allclose(out, ref, atol=2e-2, rtol=2e-2), "mismatch vs pure-JAX reference"

    print("KERNEL_OK")
</pallas_src>

<mosaic_0001>
module attributes {stable_mosaic.version = 11 : i64} {
  func.func @_mha_kernel(%arg0: i32, %arg1: i32, %arg2: memref<1x8x32xbf16, #tpu.memory_space<vmem>>, %arg3: memref<32x32xbf16, #tpu.memory_space<vmem>>, %arg4: memref<1x32xf32, #tpu.memory_space<vmem>>, %arg5: memref<32x64xbf16, #tpu.memory_space<vmem>>, %arg6: memref<1x64xf32, #tpu.memory_space<vmem>>, %arg7: memref<32x32xbf16, #tpu.memory_space<vmem>>, %arg8: memref<1x32xf32, #tpu.memory_space<vmem>>, %arg9: memref<1x8x32xf32, #tpu.memory_space<vmem>>, %arg10: memref<8x32xbf16, #tpu.memory_space<vmem>>, %arg11: memref<8x32xbf16, #tpu.memory_space<vmem>>, %arg12: memref<8x32xbf16, #tpu.memory_space<vmem>>) attributes {dimension_semantics = [#tpu.dimension_semantics<parallel>, #tpu.dimension_semantics<arbitrary>], iteration_bounds = array<i64: 2, 1>, scalar_prefetch = 0 : i64, scratch_operands = 3 : i64, tpu.core_type = #tpu.core_type<tc>, window_params = [{transform_indices = @transform_0, window_bounds = array<i64: 1, 8, 32>}, {pipeline_mode = #tpu.pipeline_mode<synchronous>, transform_indices = @transform_1, window_bounds = array<i64: 32, 32>}, {pipeline_mode = #tpu.pipeline_mode<synchronous>, transform_indices = @transform_2, window_bounds = array<i64: 1, 32>}, {pipeline_mode = #tpu.pipeline_mode<synchronous>, transform_indices = @transform_3, window_bounds = array<i64: 32, 64>}, {pipeline_mode = #tpu.pipeline_mode<synchronous>, transform_indices = @transform_4, window_bounds = array<i64: 1, 64>}, {pipeline_mode = #tpu.pipeline_mode<synchronous>, transform_indices = @transform_5, window_bounds = array<i64: 32, 32>}, {pipeline_mode = #tpu.pipeline_mode<synchronous>, transform_indices = @transform_6, window_bounds = array<i64: 1, 32>}, {transform_indices = @transform_7, window_bounds = array<i64: 1, 8, 32>}]} {
    %c0_i32 = arith.constant 0 : i32
    %0 = arith.cmpi eq, %arg1, %c0_i32 : i32
    %1 = arith.extui %0 : i1 to i32
    %c0_i32_0 = arith.constant 0 : i32
    %2 = arith.cmpi ne, %1, %c0_i32_0 : i32
    scf.if %2 {
      %c0_53 = arith.constant 0 : index
      %c0_54 = arith.constant 0 : index
      %c0_55 = arith.constant 0 : index
      %99 = vector.load %arg2[%c0_53, %c0_54, %c0_55] : memref<1x8x32xbf16, #tpu.memory_space<vmem>>, vector<1x8x32xbf16>
      %100 = vector.shape_cast %99 : vector<1x8x32xbf16> to vector<8x32xbf16>
      %c0_56 = arith.constant 0 : index
      %c0_57 = arith.constant 0 : index
      %101 = vector.load %arg5[%c0_56, %c0_57] : memref<32x64xbf16, #tpu.memory_space<vmem>>, vector<32x64xbf16>
      %cst_58 = arith.constant dense<0.000000e+00> : vector<8x64xf32>
      %102 = tpu.matmul %100, %101, %cst_58 {dimension_numbers = #tpu.dot_dimension_numbers<[1], [0], [0], [1], [0, 0, 1, 1], [], []>} : vector<8x32xbf16>, vector<32x64xbf16>, vector<8x64xf32> -> vector<8x64xf32>
      %c0_59 = arith.constant 0 : index
      %c0_60 = arith.constant 0 : index
      %103 = vector.load %arg6[%c0_59, %c0_60] : memref<1x64xf32, #tpu.memory_space<vmem>>, vector<1x64xf32>
      %104 = vector.broadcast %103 : vector<1x64xf32> to vector<8x64xf32>
      %105 = arith.addf %102, %104 : vector<8x64xf32>
      %106 = vector.extract_strided_slice %105 {offsets = [0, 0], sizes = [8, 32], strides = [1, 1]} : vector<8x64xf32> to vector<8x32xf32>
      %107 = arith.truncf %106 : vector<8x32xf32> to vector<8x32xbf16>
      %c0_61 = arith.constant 0 : index
      %c0_62 = arith.constant 0 : index
      %108 = vector.load %arg10[%c0_61, %c0_62] : memref<8x32xbf16, #tpu.memory_space<vmem>>, vector<8x32xbf16>
      tpu.vector_store %arg10[%c0_61, %c0_62], %107 {strides = array<i32>} : memref<8x32xbf16, #tpu.memory_space<vmem>>, vector<8x32xbf16>,
      %109 = vector.extract_strided_slice %105 {offsets = [0, 32], sizes = [8, 32], strides = [1, 1]} : vector<8x64xf32> to vector<8x32xf32>
      %110 = arith.truncf %109 : vector<8x32xf32> to vector<8x32xbf16>
      %c0_63 = arith.constant 0 : index
      %c0_64 = arith.constant 0 : index
      %111 = vector.load %arg11[%c0_63, %c0_64] : memref<8x32xbf16, #tpu.memory_space<vmem>>, vector<8x32xbf16>
      tpu.vector_store %arg11[%c0_63, %c0_64], %110 {strides = array<i32>} : memref<8x32xbf16, #tpu.memory_space<vmem>>, vector<8x32xbf16>,
    } else {
    }
    %c8_i32 = arith.constant 8 : i32
    %3 = arith.muli %arg1, %c8_i32 : i32
    %4 = tpu.assume_multiple %3, 8 : i32
    %c0 = arith.constant 0 : index
    %5 = arith.index_cast %4 : i32 to index
    %c0_1 = arith.constant 0 : index
    %6 = vector.load %arg2[%c0, %5, %c0_1] : memref<1x8x32xbf16, #tpu.memory_space<vmem>>, vector<1x8x32xbf16>
    %7 = vector.shape_cast %6 : vector<1x8x32xbf16> to vector<8x32xbf16>
    %c0_2 = arith.constant 0 : index
    %c0_3 = arith.constant 0 : index
    %8 = vector.load %arg3[%c0_2, %c0_3] : memref<32x32xbf16, #tpu.memory_space<vmem>>, vector<32x32xbf16>
    %cst = arith.constant dense<0.000000e+00> : vector<8x32xf32>
    %9 = tpu.matmul %7, %8, %cst {dimension_numbers = #tpu.dot_dimension_numbers<[1], [0], [0], [1], [0, 0, 1, 1], [], []>} : vector<8x32xbf16>, vector<32x32xbf16>, vector<8x32xf32> -> vector<8x32xf32>
    %c0_4 = arith.constant 0 : index
    %c0_5 = arith.constant 0 : index
    %10 = vector.load %arg4[%c0_4, %c0_5] : memref<1x32xf32, #tpu.memory_space<vmem>>, vector<1x32xf32>
    %11 = vector.broadcast %10 : vector<1x32xf32> to vector<8x32xf32>
    %12 = arith.addf %9, %11 : vector<8x32xf32>
    %13 = arith.truncf %12 : vector<8x32xf32> to vector<8x32xbf16>
    %14 = vector.extract_strided_slice %13 {offsets = [0, 0], sizes = [8, 8], strides = [1, 1]} : vector<8x32xbf16> to vector<8x8xbf16>
    %c0_6 = arith.constant 0 : index
    %c0_7 = arith.constant 0 : index
    %15 = vector.load %arg10[%c0_6, %c0_7] : memref<8x32xbf16, #tpu.memory_space<vmem>>, vector<8x8xbf16>
    %c0_8 = arith.constant 0 : index
    %c0_9 = arith.constant 0 : index
    %16 = vector.load %arg11[%c0_8, %c0_9] : memref<8x32xbf16, #tpu.memory_space<vmem>>, vector<8x8xbf16>
    %cst_10 = arith.constant dense<0.000000e+00> : vector<8x8xf32>
    %17 = tpu.matmul %14, %15, %cst_10 {dimension_numbers = #tpu.dot_dimension_numbers<[1], [1], [0], [0], [0, 0, 1, 0], [], []>} : vector<8x8xbf16>, vector<8x8xbf16>, vector<8x8xf32> -> vector<8x8xf32>
    %cst_11 = arith.constant dense<0xFF800000> : vector<8xf32>
    %18 = vector.multi_reduction <maximumf>, %17, %cst_11 [1] : vector<8x8xf32> to vector<8xf32>
    %19 = vector.shape_cast %18 : vector<8xf32> to vector<8x1xf32>
    %20 = vector.broadcast %19 : vector<8x1xf32> to vector<8x8xf32>
    %21 = arith.subf %17, %20 : vector<8x8xf32>
    %22 = arith.truncf %21 : vector<8x8xf32> to vector<8x8xbf16>
    %23 = math.exp %22 : vector<8x8xbf16>
    %24 = arith.extf %23 : vector<8x8xbf16> to vector<8x8xf32>
    %cst_12 = arith.constant dense<0.000000e+00> : vector<8xf32>
    %25 = vector.multi_reduction <add>, %24, %cst_12 [1] : vector<8x8xf32> to vector<8xf32>
    %26 = vector.shape_cast %25 : vector<8xf32> to vector<8x1xf32>
    %cst_13 = arith.constant dense<0.000000e+00> : vector<8x8xf32>
    %27 = tpu.matmul %23, %16, %cst_13 {dimension_numbers = #tpu.dot_dimension_numbers<[1], [0], [0], [1], [0, 0, 1, 1], [], []>} : vector<8x8xbf16>, vector<8x8xbf16>, vector<8x8xf32> -> vector<8x8xf32>
    %28 = tpu.reciprocal %26 {approx = true} : vector<8x1xf32> -> vector<8x1xf32>
    %29 = vector.broadcast %28 : vector<8x1xf32> to vector<8x8xf32>
    %30 = arith.mulf %27, %29 : vector<8x8xf32>
    %31 = arith.truncf %30 : vector<8x8xf32> to vector<8x8xbf16>
    %c0_14 = arith.constant 0 : index
    %c0_15 = arith.constant 0 : index
    %32 = vector.load %arg12[%c0_14, %c0_15] : memref<8x32xbf16, #tpu.memory_space<vmem>>, vector<8x8xbf16>
    tpu.vector_store %arg12[%c0_14, %c0_15], %31 {strides = array<i32>} : memref<8x32xbf16, #tpu.memory_space<vmem>>, vector<8x8xbf16>,
    %33 = vector.extract_strided_slice %13 {offsets = [0, 8], sizes = [8, 8], strides = [1, 1]} : vector<8x32xbf16> to vector<8x8xbf16>
    %c0_16 = arith.constant 0 : index
    %c8 = arith.constant 8 : index
    %34 = vector.load %arg10[%c0_16, %c8] : memref<8x32xbf16, #tpu.memory_space<vmem>>, vector<8x8xbf16>
    %c0_17 = arith.constant 0 : index
    %c8_18 = arith.constant 8 : index
    %35 = vector.load %arg11[%c0_17, %c8_18] : memref<8x32xbf16, #tpu.memory_space<vmem>>, vector<8x8xbf16>
    %cst_19 = arith.constant dense<0.000000e+00> : vector<8x8xf32>
    %36 = tpu.matmul %33, %34, %cst_19 {dimension_numbers = #tpu.dot_dimension_numbers<[1], [1], [0], [0], [0, 0, 1, 0], [], []>} : vector<8x8xbf16>, vector<8x8xbf16>, vector<8x8xf32> -> vector<8x8xf32>
    %cst_20 = arith.constant dense<0xFF800000> : vector<8xf32>
    %37 = vector.multi_reduction <maximumf>, %36, %cst_20 [1] : vector<8x8xf32> to vector<8xf32>
    %38 = vector.shape_cast %37 : vector<8xf32> to vector<8x1xf32>
    %39 = vector.broadcast %38 : vector<8x1xf32> to vector<8x8xf32>
    %40 = arith.subf %36, %39 : vector<8x8xf32>
    %41 = arith.truncf %40 : vector<8x8xf32> to vector<8x8xbf16>
    %42 = math.exp %41 : vector<8x8xbf16>
    %43 = arith.extf %42 : vector<8x8xbf16> to vector<8x8xf32>
    %cst_21 = arith.constant dense<0.000000e+00> : vector<8xf32>
    %44 = vector.multi_reduction <add>, %43, %cst_21 [1] : vector<8x8xf32> to vector<8xf32>
    %45 = vector.shape_cast %44 : vector<8xf32> to vector<8x1xf32>
    %cst_22 = arith.constant dense<0.000000e+00> : vector<8x8xf32>
    %46 = tpu.matmul %42, %35, %cst_22 {dimension_numbers = #tpu.dot_dimension_numbers<[1], [0], [0], [1], [0, 0, 1, 1], [], []>} : vector<8x8xbf16>, vector<8x8xbf16>, vector<8x8xf32> -> vector<8x8xf32>
    %47 = tpu.reciprocal %45 {approx = true} : vector<8x1xf32> -> vector<8x1xf32>
    %48 = vector.broadcast %47 : vector<8x1xf32> to vector<8x8xf32>
    %49 = arith.mulf %46, %48 : vector<8x8xf32>
    %50 = arith.truncf %49 : vector<8x8xf32> to vector<8x8xbf16>
    %c0_23 = arith.constant 0 : index
    %c8_24 = arith.constant 8 : index
    %51 = vector.load %arg12[%c0_23, %c8_24] : memref<8x32xbf16, #tpu.memory_space<vmem>>, vector<8x8xbf16>
    tpu.vector_store %arg12[%c0_23, %c8_24], %50 {strides = array<i32>} : memref<8x32xbf16, #tpu.memory_space<vmem>>, vector<8x8xbf16>,
    %52 = vector.extract_strided_slice %13 {offsets = [0, 16], sizes = [8, 8], strides = [1, 1]} : vector<8x32xbf16> to vector<8x8xbf16>
    %c0_25 = arith.constant 0 : index
    %c16 = arith.constant 16 : index
    %53 = vector.load %arg10[%c0_25, %c16] : memref<8x32xbf16, #tpu.memory_space<vmem>>, vector<8x8xbf16>
    %c0_26 = arith.constant 0 : index
    %c16_27 = arith.constant 16 : index
    %54 = vector.load %arg11[%c0_26, %c16_27] : memref<8x32xbf16, #tpu.memory_space<vmem>>, vector<8x8xbf16>
    %cst_28 = arith.constant dense<0.000000e+00> : vector<8x8xf32>
    %55 = tpu.matmul %52, %53, %cst_28 {dimension_numbers = #tpu.dot_dimension_numbers<[1], [1], [0], [0], [0, 0, 1, 0], [], []>} : vector<8x8xbf16>, vector<8x8xbf16>, vector<8x8xf32> -> vector<8x8xf32>
    %cst_29 = arith.constant dense<0xFF800000> : vector<8xf32>
    %56 = vector.multi_reduction <maximumf>, %55, %cst_29 [1] : vector<8x8xf32> to vector<8xf32>
    %57 = vector.shape_cast %56 : vector<8xf32> to vector<8x1xf32>
    %58 = vector.broadcast %57 : vector<8x1xf32> to vector<8x8xf32>
    %59 = arith.subf %55, %58 : vector<8x8xf32>
    %60 = arith.truncf %59 : vector<8x8xf32> to vector<8x8xbf16>
    %61 = math.exp %60 : vector<8x8xbf16>
    %62 = arith.extf %61 : vector<8x8xbf16> to vector<8x8xf32>
    %cst_30 = arith.constant dense<0.000000e+00> : vector<8xf32>
    %63 = vector.multi_reduction <add>, %62, %cst_30 [1] : vector<8x8xf32> to vector<8xf32>
    %64 = vector.shape_cast %63 : vector<8xf32> to vector<8x1xf32>
    %cst_31 = arith.constant dense<0.000000e+00> : vector<8x8xf32>
    %65 = tpu.matmul %61, %54, %cst_31 {dimension_numbers = #tpu.dot_dimension_numbers<[1], [0], [0], [1], [0, 0, 1, 1], [], []>} : vector<8x8xbf16>, vector<8x8xbf16>, vector<8x8xf32> -> vector<8x8xf32>
    %66 = tpu.reciprocal %64 {approx = true} : vector<8x1xf32> -> vector<8x1xf32>
    %67 = vector.broadcast %66 : vector<8x1xf32> to vector<8x8xf32>
    %68 = arith.mulf %65, %67 : vector<8x8xf32>
    %69 = arith.truncf %68 : vector<8x8xf32> to vector<8x8xbf16>
    %c0_32 = arith.constant 0 : index
    %c16_33 = arith.constant 16 : index
    %70 = vector.load %arg12[%c0_32, %c16_33] : memref<8x32xbf16, #tpu.memory_space<vmem>>, vector<8x8xbf16>
    tpu.vector_store %arg12[%c0_32, %c16_33], %69 {strides = array<i32>} : memref<8x32xbf16, #tpu.memory_space<vmem>>, vector<8x8xbf16>,
    %71 = vector.extract_strided_slice %13 {offsets = [0, 24], sizes = [8, 8], strides = [1, 1]} : vector<8x32xbf16> to vector<8x8xbf16>
    %c0_34 = arith.constant 0 : index
    %c24 = arith.constant 24 : index
    %72 = vector.load %arg10[%c0_34, %c24] : memref<8x32xbf16, #tpu.memory_space<vmem>>, vector<8x8xbf16>
    %c0_35 = arith.constant 0 : index
    %c24_36 = arith.constant 24 : index
    %73 = vector.load %arg11[%c0_35, %c24_36] : memref<8x32xbf16, #tpu.memory_space<vmem>>, vector<8x8xbf16>
    %cst_37 = arith.constant dense<0.000000e+00> : vector<8x8xf32>
    %74 = tpu.matmul %71, %72, %cst_37 {dimension_numbers = #tpu.dot_dimension_numbers<[1], [1], [0], [0], [0, 0, 1, 0], [], []>} : vector<8x8xbf16>, vector<8x8xbf16>, vector<8x8xf32> -> vector<8x8xf32>
    %cst_38 = arith.constant dense<0xFF800000> : vector<8xf32>
    %75 = vector.multi_reduction <maximumf>, %74, %cst_38 [1] : vector<8x8xf32> to vector<8xf32>
    %76 = vector.shape_cast %75 : vector<8xf32> to vector<8x1xf32>
    %77 = vector.broadcast %76 : vector<8x1xf32> to vector<8x8xf32>
    %78 = arith.subf %74, %77 : vector<8x8xf32>
    %79 = arith.truncf %78 : vector<8x8xf32> to vector<8x8xbf16>
    %80 = math.exp %79 : vector<8x8xbf16>
    %81 = arith.extf %80 : vector<8x8xbf16> to vector<8x8xf32>
    %cst_39 = arith.constant dense<0.000000e+00> : vector<8xf32>
    %82 = vector.multi_reduction <add>, %81, %cst_39 [1] : vector<8x8xf32> to vector<8xf32>
    %83 = vector.shape_cast %82 : vector<8xf32> to vector<8x1xf32>
    %cst_40 = arith.constant dense<0.000000e+00> : vector<8x8xf32>
    %84 = tpu.matmul %80, %73, %cst_40 {dimension_numbers = #tpu.dot_dimension_numbers<[1], [0], [0], [1], [0, 0, 1, 1], [], []>} : vector<8x8xbf16>, vector<8x8xbf16>, vector<8x8xf32> -> vector<8x8xf32>
    %85 = tpu.reciprocal %83 {approx = true} : vector<8x1xf32> -> vector<8x1xf32>
    %86 = vector.broadcast %85 : vector<8x1xf32> to vector<8x8xf32>
    %87 = arith.mulf %84, %86 : vector<8x8xf32>
    %88 = arith.truncf %87 : vector<8x8xf32> to vector<8x8xbf16>
    %c0_41 = arith.constant 0 : index
    %c24_42 = arith.constant 24 : index
    %89 = vector.load %arg12[%c0_41, %c24_42] : memref<8x32xbf16, #tpu.memory_space<vmem>>, vector<8x8xbf16>
    tpu.vector_store %arg12[%c0_41, %c24_42], %88 {strides = array<i32>} : memref<8x32xbf16, #tpu.memory_space<vmem>>, vector<8x8xbf16>,
    %c0_43 = arith.constant 0 : index
    %c0_44 = arith.constant 0 : index
    %90 = vector.load %arg12[%c0_43, %c0_44] : memref<8x32xbf16, #tpu.memory_space<vmem>>, vector<8x32xbf16>
    %c0_45 = arith.constant 0 : index
    %c0_46 = arith.constant 0 : index
    %91 = vector.load %arg7[%c0_45, %c0_46] : memref<32x32xbf16, #tpu.memory_space<vmem>>, vector<32x32xbf16>
    %cst_47 = arith.constant dense<0.000000e+00> : vector<8x32xf32>
    %92 = tpu.matmul %90, %91, %cst_47 {dimension_numbers = #tpu.dot_dimension_numbers<[1], [0], [0], [1], [0, 0, 1, 1], [], []>} : vector<8x32xbf16>, vector<32x32xbf16>, vector<8x32xf32> -> vector<8x32xf32>
    %c0_48 = arith.constant 0 : index
    %c0_49 = arith.constant 0 : index
    %93 = vector.load %arg8[%c0_48, %c0_49] : memref<1x32xf32, #tpu.memory_space<vmem>>, vector<1x32xf32>
    %94 = vector.broadcast %93 : vector<1x32xf32> to vector<8x32xf32>
    %95 = arith.addf %92, %94 : vector<8x32xf32>
    %c0_50 = arith.constant 0 : index
    %c0_51 = arith.constant 0 : index
    %c0_52 = arith.constant 0 : index
    %96 = vector.load %arg9[%c0_50, %c0_51, %c0_52] : memref<1x8x32xf32, #tpu.memory_space<vmem>>, vector<1x8x32xf32>
    %97 = vector.shape_cast %96 : vector<1x8x32xf32> to vector<8x32xf32>
    %98 = vector.shape_cast %95 : vector<8x32xf32> to vector<1x8x32xf32>
    tpu.vector_store %arg9[%c0_50, %c0_51, %c0_52], %98 {strides = array<i32>} : memref<1x8x32xf32, #tpu.memory_space<vmem>>, vector<1x8x32xf32>,
    return
  }
  func.func @transform_0(%arg0: i32, %arg1: i32) -> (i32, i32, i32) {
    %c0_i32 = arith.constant 0 : i32
    %c0_i32_0 = arith.constant 0 : i32
    %c0_i32_1 = arith.constant 0 : i32
    return %arg0, %c0_i32, %c0_i32_0 : i32, i32, i32
  }
  func.func @transform_1(%arg0: i32, %arg1: i32) -> (i32, i32) {
    %c0_i32 = arith.constant 0 : i32
    %c0_i32_0 = arith.constant 0 : i32
    %c0_i32_1 = arith.constant 0 : i32
    return %c0_i32, %c0_i32_0 : i32, i32
  }
  func.func @transform_2(%arg0: i32, %arg1: i32) -> (i32, i32) {
    %c0_i32 = arith.constant 0 : i32
    %c0_i32_0 = arith.constant 0 : i32
    %c0_i32_1 = arith.constant 0 : i32
    return %c0_i32, %c0_i32_0 : i32, i32
  }
  func.func @transform_3(%arg0: i32, %arg1: i32) -> (i32, i32) {
    %c0_i32 = arith.constant 0 : i32
    %c0_i32_0 = arith.constant 0 : i32
    %c0_i32_1 = arith.constant 0 : i32
    return %c0_i32, %c0_i32_0 : i32, i32
  }
  func.func @transform_4(%arg0: i32, %arg1: i32) -> (i32, i32) {
    %c0_i32 = arith.constant 0 : i32
    %c0_i32_0 = arith.constant 0 : i32
    %c0_i32_1 = arith.constant 0 : i32
    return %c0_i32, %c0_i32_0 : i32, i32
  }
  func.func @transform_5(%arg0: i32, %arg1: i32) -> (i32, i32) {
    %c0_i32 = arith.constant 0 : i32
    %c0_i32_0 = arith.constant 0 : i32
    %c0_i32_1 = arith.constant 0 : i32
    return %c0_i32, %c0_i32_0 : i32, i32
  }
  func.func @transform_6(%arg0: i32, %arg1: i32) -> (i32, i32) {
    %c0_i32 = arith.constant 0 : i32
    %c0_i32_0 = arith.constant 0 : i32
    %c0_i32_1 = arith.constant 0 : i32
    return %c0_i32, %c0_i32_0 : i32, i32
  }
  func.func @transform_7(%arg0: i32, %arg1: i32) -> (i32, i32, i32) {
    %c0_i32 = arith.constant 0 : i32
    %c0_i32_0 = arith.constant 0 : i32
    return %arg0, %arg1, %c0_i32 : i32, i32, i32
  }
}

</mosaic_0001>

<bundles_post_ra>
// kernel: tpu_custom_call.1
= control target key start
LH: loop header
LB: loop body
LE: loop exit
PB: predicated region body
PF: predicated region fallthrough
CT: control target
= control target key end

     0   :  { %12 = vsyncpa [#allocation6], 0  ;;  %s2018_s0 = inlined_call_operand.hbm [shape: bf16[2,8,32], index: 0, kind: input, shape index: {}]   ;;  %s2019_s1 = inlined_call_operand.hbm [shape: bf16[32,32], index: 1, kind: input, shape index: {}]   ;;  %s2020_s2 = inlined_call_operand.vmem [shape: f32[1,32], index: 2, kind: input, shape index: {}]   ;;  %s2021_s3 = inlined_call_operand.hbm [shape: bf16[32,64], index: 3, kind: input, shape index: {}]   ;;  %s2022_s4 = inlined_call_operand.vmem [shape: f32[1,64], index: 4, kind: input, shape index: {}]   ;;  %s2023_s5 = inlined_call_operand.vmem [shape: bf16[32,32], index: 5, kind: input, shape index: {}]   ;;  %s2024_s6 = inlined_call_operand.vmem [shape: f32[1,32], index: 6, kind: input, shape index: {}]   ;;  %s2025_s7 = inlined_call_operand.hbm [shape: f32[2,8,32], index: 7, kind: output, shape index: {}]  }
   0x1   :  { %14 = vsyncpa [#allocation6 + $0x1], 0 }
   0x2   :  { %15 = vsyncpa [#allocation9], 0 }
   0x3   :  { %16 = vsyncpa [#allocation7], 0 }
   0x4   :  { %18 = vsyncpa [#allocation7 + $0x1], 0  ;;  %s1677_s24 = smov 0   ;;  %s1679_s25 = smov 0  }
   0x5   :  { %s1681_s26 = smov 0   ;;  %s1683_s27 = smov 0  }
   0x6   :  { %s1685_s28 = smov 0   ;;  %s1687_s29 = smov 0  }
   0x7 LB: > { %2032 = sst [smem:[#allocation15_spill]] %s1600_s24  ;;  %s1178_s30 = sadd.s32 4294967295, %s1620_s29   ;;  %s1620_s29 = sphi %s1687_s29, %s24_s29   ;;  %s1616_s28 = sphi %s1685_s28, %s2053_s28   ;;  %s1612_s27 = sphi %s1683_s27, %s2052_s27   ;;  %s1608_s26 = sphi %s1681_s26, %s2051_s26   ;;  %s1604_s25 = sphi %s1679_s25, %s2050_s25   ;;  %s1600_s24 = sphi %s1677_s24, %s2049_s24  }
   0x8   : > { %s1179_s8 = sadd.s32 4294967294, %s1620_s29   ;;  %p56_p0 = scmp.ne.s32.totalorder %s1604_s25, %s1600_s24 }
   0x9   : > { %p1711_p1 = scmp.eq.s32.totalorder %s1178_s30, 0  ;;  %p1715_p2 = scmp.eq.s32.totalorder %s1178_s30, 1 }
   0xa   : > { %p214_p3 = scmp.eq.s32.totalorder %s1179_s8, 1  ;;  %p1180_p5 = scmp.ge.s32.totalorder %s1620_s29, 1 }
   0xb   : > { %s2033_s9 = scalar_select %p1711_p1, 1, 0 }
   0xc   : > { %p1721_p4 = por %p1711_p1, %p56_p0  ;;  %p1726_p6 = por %p214_p3, %p56_p0 }
   0xd   : > { %p221_p7 = scmp.lt.s32.totalorder %s1620_s29, 3  ;;  %s1622_s14 = smov [#allocation8]  }
   0xe   : > { %s2035_s11 = scalar_select %p1721_p4, 1, 0 }
   0xf   : > { %s2036_s12 = scalar_select %p1726_p6, 1, 0 }
  0x10   : > { %p1731_p8 = pnand %p1180_p5, %p221_p7  ;;  %s233_s15 = sshll.u32 %s1622_s14, 4  ;;  %s1735_s15 = int_to_ptr.vmem [resolvable:$true] %s233_s15 }
  0x11   : > { %2037 = sst [smem:[#allocation16_spill]] %s2036_s12  ;;  %s1623_s17 = smov [#allocation10]  }
  0x12   : > { %p1338_p9 = pneg %p1731_p8  ;;  %s249_s18 = sshll.u32 %s1623_s17, 4  ;;  %s1746_s18 = int_to_ptr.vmem [resolvable:$true] %s249_s18 }
  0x13   : > { %s1448_s21 = scalar_lea.hbm %s2019_s1, 256 }
  0x14   : > { %p1742_p11 = pnand %p1338_p9, %p1711_p1  ;;  %p1449_p12 = scmp.ne.s32.totalorder %s2019_s1, %s1448_s21 }
  0x15   : > { %p1455_p5 = scmp.lt.u32.totalorder %s1448_s21, %s2019_s1 }
  0x16   : > { %p1450_p13 = pneg %p1742_p11 }
  0x18   : > { %p1451_p0 = pnand %p1450_p13, %p1449_p12 }
  0x1a   : > { %p1452_p3 = pneg %p1451_p0 }
  0x1c   : > { %p1457_p7 = pnand %p1455_p5, %p1452_p3 }
  0x1e   : > { %1460 = shalt.err (!%p1457_p7)
}
  0x1f   : > { %s1461_s14 = scalar_lea.vmem %s1735_s15, 256  ;;  %p1469_p1 = scmp.lt.s32.totalorder %s1735_s15, %s1735_s15 }
  0x20   : > { %p1462_p9 = scmp.ne.s32.totalorder %s1735_s15, %s1461_s14  ;;  %p1470_p12 = scmp.lt.s32.totalorder %s1461_s14, %s1461_s14 }
  0x22   : > { %p1464_p10 = pnand %p1462_p9, %p1450_p13  ;;  %p1471_p0 = por %p1470_p12, %p1469_p1 }
  0x24   : > { %p1465_p6 = pneg %p1464_p10 }
  0x26   : > { %p1472_p4 = pnand %p1471_p0, %p1465_p6 }
  0x28   : > { %1475 = shalt.err (!%p1472_p4)
}
  0x29   : > { %s1624_s17 = smov 64   ;;  %s1625_s19 = smov 4  }
  0x2a   : > { %1341 = dma.hbm_to_vmem [thread:$0]  (!%p1742_p11), %s2019_s1, 256, %s1735_s15, [#allocation9], %s1624_s17, %s1624_s17, %s1625_s19  }
  0x2b   : > { %s1476_s30 = scalar_lea.hbm %s2021_s3, 256 }
  0x2c   : > { %p1477_p1 = scmp.ne.s32.totalorder %s2021_s3, %s1476_s30  ;;  %p1483_p10 = scmp.lt.u32.totalorder %s1476_s30, %s2021_s3 }
  0x2e   : > { %p1479_p4 = pnand %p1477_p1, %p1450_p13 }
  0x30   : > { %p1480_p6 = pneg %p1479_p4 }
  0x32   : > { %p1485_p3 = pnand %p1483_p10, %p1480_p6 }
  0x34   : > { %1488 = shalt.err (!%p1485_p3)
}
  0x35   : > { %s1489_s15 = scalar_lea.vmem %s1746_s18, 256  ;;  %p1497_p12 = scmp.lt.s32.totalorder %s1746_s18, %s1746_s18 }
  0x36   : > { %p1490_p5 = scmp.ne.s32.totalorder %s1746_s18, %s1489_s15  ;;  %p1498_p0 = scmp.lt.s32.totalorder %s1489_s15, %s1489_s15 }
  0x38   : > { %p1492_p7 = pnand %p1490_p5, %p1450_p13  ;;  %p1499_p1 = por %p1498_p0, %p1497_p12 }
  0x3a   : > { %p1493_p9 = pneg %p1492_p7 }
  0x3c   : > { %p1500_p4 = pnand %p1499_p1, %p1493_p9 }
  0x3e   : > { %1503 = shalt.err (!%p1500_p4)
}
  0x3f   : > { %1344 = dma.hbm_to_vmem [thread:$0]  (!%p1742_p11), %s2021_s3, 256, %s1746_s18, [#allocation9], %s1624_s17, %s1624_s17, %s1625_s19  }
  0x40   : > { %s36_s20 = sadd.s32 1, %s1616_s28  ;;  %s43_s21 = sadd.s32 1, %s1608_s26 }
  0x41   : > { %p38_p13 = scmp.ge.s32.totalorder %s36_s20, 2  ;;  %p50_p6 = scmp.ne.s32.totalorder %s1608_s26, %s1604_s25 }
  0x42   : > { %p51_p10 = scmp.eq.s32.totalorder %s1620_s29, 0  ;;  %p1355_p3 = scmp.lt.s32.totalorder %s1620_s29, 2 }
  0x43   : > { %s2055_s20 = smov (%p38_p13, %s36_s20), 0  ;;  %p1810_p7 = por %p1715_p2, %p50_p6 }
  0x44   : > { %p52_p5 = por %p51_p10, %p50_p6  ;;  %s40_s22 = ssub.s32 %s1616_s28, %s2055_s20 }
  0x45   : > { %s2040_s16 = scalar_select %p1810_p7, 1, 0 }
  0x46   : > { %s272_s23 = sand.u32 1, %s1608_s26   ;;  %p41_p9 = scmp.eq.s32.totalorder %s40_s22, 0 }
  0x47   : > { %s1184_s18 = sshll.u32 %s272_s23, 2  ;;  %s1185_s17 = sshll.u32 %s1616_s28, 6 }
  0x48   : > { %s1819_s19 = scalar_select %p41_p9, %s1608_s26, %s43_s21  }
  0x49   : > { %s1824_s14 = scalar_lea.hbm %s2018_s0, %s1185_s17  ;;  %s276_s10 = scalar_lea.vmem [#allocation5], %s1184_s18 }
  0x4a   : > { %s283_s15 = sshll.u32 %s276_s10, 4  ;;  %p1828_p2 = pnand %p1355_p3, %p52_p5  ;;  %s1832_s15 = int_to_ptr.vmem [resolvable:$true] %s283_s15 }
  0x4b   : > { %s273_s12 = scalar_lea.sflag [#allocation6], %s272_s23  ;;  %s1504_s21 = scalar_lea.hbm %s1824_s14, 64 }
  0x4c   : > { %p1505_p11 = scmp.ne.s32.totalorder %s1824_s14, %s1504_s21  ;;  %p1506_p12 = pneg %p1828_p2 }
  0x4d   : > { %s1509_s17 = scalar_lea.hbm %s2018_s0, 128  ;;  %p1510_p4 = scmp.lt.u32.totalorder %s1824_s14, %s2018_s0 }
  0x4e   : > { %p1507_p0 = pnand %p1506_p12, %p1505_p11  ;;  %p1511_p13 = scmp.lt.u32.totalorder %s1509_s17, %s1504_s21 }
  0x4f   : > { %p1513_p10 = scmp.lt.u32.totalorder %s1504_s21, %s1824_s14 }
  0x50   : > { %p1508_p1 = pneg %p1507_p0  ;;  %p1512_p6 = por %p1511_p13, %p1510_p4 }
  0x52   : > { %p1514_p3 = por %p1513_p10, %p1512_p6 }
  0x54   : > { %p1515_p5 = pnand %p1514_p3, %p1508_p1 }
  0x56   : > { %1518 = shalt.err (!%p1515_p5)
}
  0x57   : > { %s1519_s23 = scalar_lea.vmem %s1832_s15, 64  ;;  %s1626_s10 = smov [#allocation5]  }
  0x58   : > { %p1520_p9 = scmp.ne.s32.totalorder %s1832_s15, %s1519_s23  ;;  %s1524_s22 = sshll.u32 %s1626_s10, 4  ;;  %s1525_s22 = int_to_ptr.vmem [resolvable:$false] %s1524_s22 }
  0x59   : > { %s1526_s18 = scalar_lea.vmem %s1525_s22, 128  ;;  %p1527_p7 = scmp.lt.s32.totalorder %s1832_s15, %s1525_s22 }
  0x5a   : > { %p1522_p11 = pnand %p1520_p9, %p1506_p12  ;;  %p1528_p4 = scmp.lt.s32.totalorder %s1526_s18, %s1519_s23 }
  0x5c   : > { %p1523_p0 = pneg %p1522_p11  ;;  %p1529_p13 = por %p1528_p4, %p1527_p7 }
  0x5e   : > { %p1530_p6 = pnand %p1529_p13, %p1523_p0 }
  0x60   : > { %1533 = shalt.err (!%p1530_p6)
}
  0x61   : > { %1348 = dma.hbm_to_vmem [thread:$0]  (!%p1828_p2), %s1824_s14, 64, %s1832_s15, %s273_s12  }
  0x62   : > { %292 = sbr.rel (%p1731_p8) target bundleno = 1424 (0x590), region = 48  ;;  %s1862_s21 = sand.u32 (!%p1731_p8), 1, %s1604_s25  }
  0x63   : > { %s1187_s17 = sshll.u32 (!%p1731_p8), %s1862_s21, 2  ;;  %s295_s30 = scalar_lea.sflag (!%p1731_p8), [#allocation6], %s1862_s21 }
  0x64   : > { %s298_s8 = scalar_lea.vmem (!%p1731_p8), [#allocation5], %s1187_s17  ;;  %p2042_p7 = scmp.ne.s32.totalorder (!%p1731_p8), %s2035_s11, 0 }
  0x69   : > { %1587 = dma.done.wait (%p2042_p7), %s295_s30, 64  }
  0x6a   : > { %1589 = vsyncadd (%p2042_p7), %s295_s30, 4294967232  ;;  %p2043_p12 = scmp.ne.s32.totalorder %s2033_s9, 0 }
  0x6c   : > { %1591 = dma.done.wait (%p2043_p12), [#allocation9], 512  }
  0x6d   : > { %1593 = vsyncadd (%p2043_p12), [#allocation9], 4294966784  ;;  %v1627_v0 = vmov 0.0   ;;  %vm1628_vm0 = vmmov 0   ;;  %v1420_v1 = vld [vmem:[#allocation10] sm:$0xff]   ;;  %v1421_v2 = vld [vmem:[#allocation10 + $0x8] sm:$0xff]  }
  0x6e   : > { %1254 = vmatprep.subr.bf16.mxu0 %v1627_v0  ;;  %1258 = vmatprep.mubr.msk.bf16.mxu0 %vm1628_vm0, %v1627_v0  ;;  %v1422_v3 = vld [vmem:[#allocation8] sm:$0xff]   ;;  %v1423_v4 = vld [vmem:[#allocation8 + $0x8] sm:$0xff]   ;;  %v342_v5 = vld [vmem:[%s298_s8] sm:$0xf]  ;;  %vm366_vm1 = vcmask 261120   ;;  %vm411_vm2 = vcmask 257024  }
  0x6f   : > { %1262 = vmatprep.subr.bf16.mxu1 %v1627_v0  ;;  %1266 = vmatprep.mubr.msk.bf16.mxu1 %vm1628_vm0, %v1627_v0  ;;  %v425_v6 = vld [vmem:[%s298_s8] sm:$0xf]  ;;  %vm496_vm3 = vcmask 64512   ;;  %s1629_s15 = smov 112   ;;  %s1630_s24 = smov 120   ;;  %vm558_vm4 = vcmask 1043456  }
  0x70   : > { %1255 = vmatpush3.bf16.msra.mxu0 %v1420_v1  ;;  %1263 = vmatpush3.bf16.msra.mxu1 %v1422_v3  ;;  %v1191_v7 = vld [vmem:[%s2022_s4] ss:$0 sm:$0xff]  ;;  %s1631_s12 = smov 104   ;;  %s1632_s23 = smov 96   ;;  %vm605_vm5 = vcmask 60416   ;;  %vm735_vm6 = vcmask 126016  }
  0x71   : > { %1256 = vmatprep.subr.bf16.mxu0 %v1627_v0  ;;  %1264 = vmatprep.subr.bf16.mxu1 %v1627_v0  ;;  %v1196_v18 = vld [vmem:[%s2020_s2] ss:$0 sm:$0xff]  ;;  %s1633_s10 = smov 8   ;;  %s1634_s8 = smov 16   ;;  %vm864_vm7 = vcmask 191616   ;;  %vm993_vm8 = vcmask 257216  }
  0x72   : > { %s1635_s9 = smov 24   ;;  %s1190_s11 = sshll.u32 %s1862_s21, 3 }
  0x73   : > { %p2044_p2 = scmp.ne.s32.totalorder %s2040_s16, 0  ;;  %s1636_s17 = smov [#allocation11]  }
  0x74   : > { %1257 = vmatpush3.bf16.msra.mxu0 %v1421_v2  ;;  %1265 = vmatpush3.bf16.msra.mxu1 %v1423_v4  ;;  %s1538_s30 = sshll.u32 %s1636_s17, 4  ;;  %s1539_s30 = int_to_ptr.vmem [resolvable:$false] %s1538_s30 }
  0x75   : > { %1270 = vmatprep.subr.bf16.mxu0 %v1627_v0  ;;  %1276 = vmatprep.subr.bf16.mxu1 %v1627_v0 }
  0x77   : > { %1259 = vmatmul.mubr.msk.bf16.vlgmr.msra.gmra.mrb[0].mxu0 %vm366_vm1, %v342_v5  ;;  %1267 = vmatmul.mubr.msk.bf16.vlgmr.msra.gmra.mrb[0].mxu1 %vm366_vm1, %v425_v6 }
  0x78   : > { %1272 = vmatprep.mubr.msk.bf16.mxu0 %vm1628_vm0, %v1627_v0  ;;  %1278 = vmatprep.mubr.msk.bf16.mxu1 %vm1628_vm0, %v1627_v0 }
 0x14a   : > { %v404_v8 = vpop.f32.mrb[0].mxu0  ;;  %v487_v14 = vpop.f32.mrb[0].mxu1 }
 0x14b   : > { %v405_v9 = vadd.f32 %v1191_v7, %v404_v8  ;;  %v1260_v10 = vpop.f32.mrb[1].mxu0  ;;  %v1268_v15 = vpop.f32.mrb[1].mxu1  ;;  %v488_v19 = vadd.f32 %v1196_v18, %v487_v14 }
 0x14c   : > { %v407_v11 = vpop.f32.mrb[2].mxu0  ;;  %v490_v16 = vpop.f32.mrb[2].mxu1 }
 0x14d   : > { %v410_v12 = vpack.c.bf16 %v405_v9, %v405_v9  ;;  %v1261_v13 = vpop.f32.mrb[3].mxu0  ;;  %v1269_v17 = vpop.f32.mrb[3].mxu1  ;;  %v493_v24 = vpack.c.bf16 %v488_v19, %v488_v19 }
 0x14f   : > { %412 = vst.msk [vmem:[#allocation2] sm:$0xf] %vm411_vm2, %v410_v12 }
 0x156   : > { %v494_v20 = vld [vmem:[#allocation2] sm:$0xf] }
 0x157   : > { %v1424_v21 = vld [vmem:[#allocation2] ss:$0 sps:$4 sm:$0xff]   ;;  %v501_v22 = vsel %vm496_vm3, %v494_v20, 0 }
 0x158   : > { %v1425_v23 = vld [vmem:[#allocation2] ss:$0 sps:$4 sm:$0xff]   ;;  %1271 = vmatpush3.bf16.xpose.msra.mxu0 %v501_v22  ;;  %744 = vrot.lane.b32.xlu1 %v1424_v21, %s1629_s15 }
 0x159   : > { %615 = vrot.lane.b32.xlu0 %v1425_v23, %s1630_s24  ;;  %1282 = vmatprep.subr.bf16.mxu0 %v1627_v0  ;;  %v1426_v25 = vld [vmem:[#allocation2] ss:$0 sps:$4 sm:$0xff]  }
 0x15c   : > { %739 = vrot.lane.b32.xlu1 %v493_v24, %s1629_s15 }
 0x15d   : > { %610 = vrot.lane.b32.xlu0 %v493_v24, %s1630_s24 }
 0x15f   : > { %1273 = vmatmul.mubr.msk.bf16.vlgmr.msra.gmra.mrb[4].mxu0 %vm496_vm3, %v493_v24 }
 0x160   : > { %868 = vrot.lane.b32.xlu1 %v493_v24, %s1631_s12  ;;  %1284 = vmatprep.mubr.msk.bf16.mxu0 %vm1628_vm0, %v1627_v0 }
 0x161   : > { %873 = vrot.lane.b32.xlu0 %v1426_v25, %s1631_s12 }
 0x165   : > { %416 = vrot.lane.b32.xlu0 %v410_v12, %s1632_s23 }
 0x1ca   : > { %v745_v29 = vpop.permute.xlu1 %744 }
 0x1cb   : > { %v616_v26 = vpop.permute.xlu0 %615  ;;  %v750_v31 = vsel %vm496_vm3, %v745_v29, 0 }
 0x1cc   : > { %v621_v27 = vsel %vm496_vm3, %v616_v26, 0 }
 0x1cd   : > { %1283 = vmatpush3.bf16.xpose.msra.mxu0 %v621_v27 }
 0x1ce   : > { %1294 = vmatprep.subr.bf16.mxu0 %v1627_v0  ;;  %v740_v33 = vpop.permute.xlu1 %739 }
 0x1cf   : > { %v611_v28 = vpop.permute.xlu0 %610 }
 0x1d2   : > { %v869_v37 = vpop.permute.xlu1 %868 }
 0x1d3   : > { %v874_v30 = vpop.permute.xlu0 %873 }
 0x1d4   : > { %1285 = vmatmul.mubr.msk.bf16.vlgmr.msra.gmra.mrb[8].mxu0 %vm496_vm3, %v611_v28  ;;  %v879_v34 = vsel %vm496_vm3, %v874_v30, 0 }
 0x1d5   : > { %1295 = vmatpush3.bf16.xpose.msra.mxu0 %v750_v31  ;;  %1296 = vmatprep.mubr.msk.bf16.mxu0 %vm1628_vm0, %v1627_v0 }
 0x1d6   : > { %1306 = vmatprep.subr.bf16.mxu0 %v1627_v0 }
 0x1d7   : > { %v417_v32 = vpop.permute.xlu0 %416 }
 0x1d8   : > { %419 = vst.msk [vmem:[#allocation3] sm:$0xf] %vm411_vm2, %v417_v32 }
 0x1dc   : > { %1297 = vmatmul.mubr.msk.bf16.vlgmr.msra.gmra.mrb[12].mxu0 %vm496_vm3, %v740_v33 }
 0x1dd   : > { %1307 = vmatpush3.bf16.xpose.msra.mxu0 %v879_v34  ;;  %1308 = vmatprep.mubr.msk.bf16.mxu0 %vm1628_vm0, %v1627_v0 }
 0x1de   : > { %1318 = vmatprep.subr.bf16.mxu0 %v1627_v0 }
 0x1df   : > { %v495_v35 = vld [vmem:[#allocation3] sm:$0xf] }
 0x1e0   : > { %v560_v36 = vsel %vm558_vm4, %v495_v35, 0  ;;  %v1427_v43 = vld [vmem:[#allocation3] ss:$0 sps:$4 sm:$0xff]  }
 0x1e1   : > { %1277 = vmatpush3.bf16.msra.mxu1 %v560_v36  ;;  %v1428_v62 = vld [vmem:[#allocation3] ss:$0 sps:$4 sm:$0xff]  }
 0x1e2   : > { %1288 = vmatprep.subr.bf16.mxu1 %v1627_v0  ;;  %v1429_v1 = vld [vmem:[#allocation3] ss:$0 sps:$4 sm:$0xff]  }
 0x1e4   : > { %1309 = vmatmul.mubr.msk.bf16.vlgmr.msra.gmra.mrb[16].mxu0 %vm496_vm3, %v869_v37 }
 0x1e5   : > { %1322 = vmatprep.mubr.msk.bf16.mxu0 %vm1628_vm0, %v1627_v0 }
 0x232   : > { %v537_v38 = vpop.f32.mrb[4].mxu0 }
 0x233   : > { %v1274_v39 = vpop.f32.mrb[5].mxu0  ;;  %v543_v40 = vsel %vm496_vm3, %v537_v38, -inf }
 0x234   : > { %544 = vmax.xlane.f32.xlu1 %v543_v40  ;;  %v540_v41 = vpop.f32.mrb[6].mxu0 }
 0x235   : > { %v1275_v42 = vpop.f32.mrb[7].mxu0 }
 0x245   : > { %807 = vrot.lane.b32.xlu1 %v1427_v43, %s1629_s15  ;;  %s1222_s15 = sshll.u32 %s1612_s27, 7  ;;  %s1064_s27 = scalar_lea.sflag [#allocation7], %s1862_s21 }
 0x246   : > { %s1968_s22 = scalar_lea.hbm %s2025_s7, %s1222_s15 }
 0x2a7   : > { %v657_v44 = vpop.f32.mrb[8].mxu0 }
 0x2a8   : > { %v1286_v45 = vpop.f32.mrb[9].mxu0  ;;  %v663_v46 = vsel %vm496_vm3, %v657_v44, -inf }
 0x2a9   : > { %664 = vmax.xlane.f32.xlu0 %v663_v46  ;;  %v660_v47 = vpop.f32.mrb[10].mxu0 }
 0x2aa   : > { %v1287_v48 = vpop.f32.mrb[11].mxu0 }
 0x2af   : > { %v786_v49 = vpop.f32.mrb[12].mxu0 }
 0x2b0   : > { %v1298_v50 = vpop.f32.mrb[13].mxu0  ;;  %v792_v51 = vsel %vm496_vm3, %v786_v49, -inf }
 0x2b1   : > { %793 = vmax.xlane.f32.xlu0 %v792_v51  ;;  %v789_v52 = vpop.f32.mrb[14].mxu0 }
 0x2b2   : > { %v1299_v53 = vpop.f32.mrb[15].mxu0  ;;  %v1430_v52 = vld [vmem:[%s2023_s5] sm:$0xff]  }
 0x2b3   : > { %1319 = vmatpush3.bf16.msra.mxu0 %v1430_v52 }
 0x2b4   : > { %1320 = vmatprep.subr.bf16.mxu0 %v1627_v0 }
 0x2b7   : > { %v915_v54 = vpop.f32.mrb[16].mxu0 }
 0x2b8   : > { %v1310_v55 = vpop.f32.mrb[17].mxu0  ;;  %v921_v56 = vsel %vm496_vm3, %v915_v54, -inf }
 0x2b9   : > { %922 = vmax.xlane.f32.xlu1 %v921_v56  ;;  %v918_v57 = vpop.f32.mrb[18].mxu0  ;;  %v1431_v56 = vld [vmem:[%s2023_s5 + $0x8] sm:$0xff]  }
 0x2ba   : > { %v1311_v58 = vpop.f32.mrb[19].mxu0  ;;  %1321 = vmatpush3.bf16.msra.mxu0 %v1431_v56 }
 0x2c1   : > { %v545_v59 = vpop.xlane.xlu1 %544 }
 0x2c2   : > { %v546_v60 = vsub.f32 %v537_v38, %v545_v59 }
 0x2c4   : > { %v547_v61 = vpack.c.bf16 %v546_v60, %v546_v60 }
 0x2c5   : > { %v808_v10 = vpop.permute.xlu1 %807 }
 0x2c6   : > { %v549_v63 = vmul.bf16 1069105081, %v547_v61  ;;  %v813_v17 = vsel %vm558_vm4, %v808_v10, 0 }
 0x2c7   : > { %678 = vrot.lane.b32.xlu0 %v1428_v62, %s1630_s24  ;;  %s336_s24 = scalar_lea.vmem [#allocation11], %s1190_s11 }
 0x2c8   : > { %1432 = vpow.bf16 %v549_v63 }
 0x2ca   : > { %936 = vrot.lane.b32.xlu1 %v1429_v1, %s1631_s12  ;;  %s1078_s12 = sshll.u32 %s336_s24, 4  ;;  %s1970_s12 = int_to_ptr.vmem [resolvable:$true] %s1078_s12 }
 0x2cb   : > { %s1534_s18 = scalar_lea.vmem %s1970_s12, 128  ;;  %p1541_p3 = scmp.lt.s32.totalorder %s1970_s12, %s1539_s30 }
 0x2cc   : > { %p1535_p8 = scmp.ne.s32.totalorder %s1970_s12, %s1534_s18 }
 0x2ce   : > { %p1536_p1 = pnand %p1535_p8, %p2044_p2 }
 0x2d0   : > { %p1537_p10 = pneg %p1536_p1 }
 0x2d3   : > { %v1433_v2 = vpop.eup %1432 }
 0x2d4   : > { %1279 = vmatmul.mubr.msk.bf16.vlgmr.msra.gmra.mrb[4].mxu1 %vm496_vm3, %v1433_v2  ;;  %v551_v30 = vunpack.c.l.bf16 %v1433_v2 }
 0x2d5   : > { %1290 = vmatprep.mubr.msk.bf16.mxu1 %vm1628_vm0, %v1627_v0 }
 0x2d6   : > { %v552_v31 = vsel %vm496_vm3, %v551_v30, 0.0 }
 0x336   : > { %v665_v3 = vpop.xlane.xlu0 %664 }
 0x337   : > { %v666_v4 = vsub.f32 %v657_v44, %v665_v3 }
 0x339   : > { %v667_v5 = vpack.c.bf16 %v666_v4, %v666_v4 }
 0x33b   : > { %v669_v6 = vmul.bf16 1069105081, %v667_v5 }
 0x33d   : > { %1434 = vpow.bf16 %v669_v6  ;;  %v1217_v6 = vld [vmem:[%s2024_s6] ss:$0 sm:$0xff] }
 0x33e   : > { %v794_v7 = vpop.xlane.xlu0 %793 }
 0x33f   : > { %v795_v8 = vsub.f32 %v786_v49, %v794_v7 }
 0x341   : > { %v796_v9 = vpack.c.bf16 %v795_v8, %v795_v8 }
 0x342   : > { %v679_v11 = vpop.permute.xlu0 %678 }
 0x343   : > { %v798_v12 = vmul.bf16 1069105081, %v796_v9  ;;  %v684_v13 = vsel %vm558_vm4, %v679_v11, 0 }
 0x344   : > { %1289 = vmatpush3.bf16.msra.mxu1 %v684_v13 }
 0x345   : > { %1436 = vpow.bf16 %v798_v12  ;;  %1300 = vmatprep.subr.bf16.mxu1 %v1627_v0 }
 0x346   : > { %v923_v14 = vpop.xlane.xlu1 %922 }
 0x347   : > { %v924_v15 = vsub.f32 %v915_v54, %v923_v14 }
 0x348   : > { %v1435_v16 = vpop.eup %1434 }
 0x349   : > { %v925_v18 = vpack.c.bf16 %v924_v15, %v924_v15  ;;  %1291 = vmatmul.mubr.msk.bf16.vlgmr.msra.gmra.mrb[8].mxu1 %vm496_vm3, %v1435_v16  ;;  %v671_v19 = vunpack.c.l.bf16 %v1435_v16 }
 0x34a   : > { %1301 = vmatpush3.bf16.msra.mxu1 %v813_v17  ;;  %1302 = vmatprep.mubr.msk.bf16.mxu1 %vm1628_vm0, %v1627_v0  ;;  %v937_v22 = vpop.permute.xlu1 %936 }
 0x34b   : > { %v927_v20 = vmul.bf16 1069105081, %v925_v18  ;;  %v672_v21 = vsel %vm496_vm3, %v671_v19, 0.0  ;;  %1312 = vmatprep.subr.bf16.mxu1 %v1627_v0  ;;  %v942_v24 = vsel %vm558_vm4, %v937_v22, 0 }
 0x34c   : > { %673 = vadd.xlane.f32.xlu0 %v672_v21 }
 0x34d   : > { %1438 = vpow.bf16 %v927_v20 }
 0x350   : > { %v1437_v23 = vpop.eup %1436 }
 0x351   : > { %1303 = vmatmul.mubr.msk.bf16.vlgmr.msra.gmra.mrb[12].mxu1 %vm496_vm3, %v1437_v23  ;;  %v800_v25 = vunpack.c.l.bf16 %v1437_v23 }
 0x352   : > { %1313 = vmatpush3.bf16.msra.mxu1 %v942_v24  ;;  %1314 = vmatprep.mubr.msk.bf16.mxu1 %vm1628_vm0, %v1627_v0 }
 0x353   : > { %v801_v26 = vsel %vm496_vm3, %v800_v25, 0.0 }
 0x354   : > { %802 = vadd.xlane.f32.xlu1 %v801_v26 }
 0x358   : > { %v1439_v27 = vpop.eup %1438 }
 0x359   : > { %1315 = vmatmul.mubr.msk.bf16.vlgmr.msra.gmra.mrb[16].mxu1 %vm496_vm3, %v1439_v27  ;;  %v929_v28 = vunpack.c.l.bf16 %v1439_v27 }
 0x35b   : > { %v930_v29 = vsel %vm496_vm3, %v929_v28, 0.0 }
 0x35c   : > { %931 = vadd.xlane.f32.xlu0 %v930_v29 }
 0x360   : > { %553 = vadd.xlane.f32.xlu0 %v552_v31 }
 0x3a7   : > { %v596_v32 = vpop.f32.mrb[4].mxu1 }
 0x3a8   : > { %v1280_v33 = vpop.f32.mrb[5].mxu1 }
 0x3a9   : > { %v599_v34 = vpop.f32.mrb[6].mxu1 }
 0x3aa   : > { %v1281_v35 = vpop.f32.mrb[7].mxu1 }
 0x3d9   : > { %v674_v36 = vpop.xlane.xlu0 %673 }
 0x3e1   : > { %v803_v42 = vpop.xlane.xlu1 %802 }
 0x3e9   : > { %v932_v37 = vpop.xlane.xlu0 %931 }
 0x3ed   : > { %v554_v38 = vpop.xlane.xlu0 %553 }
 0x3ee   : > { %1440 = vrcp.f32 %v554_v38 }
 0x3ef   : > { %1442 = vrcp.f32 %v674_v36 }
 0x3f0   : > { %1444 = vrcp.f32 %v803_v42 }
 0x3f1   : > { %1446 = vrcp.f32 %v932_v37 }
 0x3f8   : > { %v1441_v39 = vpop.eup %1440 }
 0x3f9   : > { %v603_v40 = vmul.f32 %v1441_v39, %v596_v32  ;;  %v1443_v43 = vpop.eup %1442 }
 0x3fa   : > { %v1445_v50 = vpop.eup %1444 }
 0x3fb   : > { %v604_v41 = vpack.c.bf16 %v603_v40, %v603_v40  ;;  %v1447_v59 = vpop.eup %1446 }
 0x3fd   : > { %606 = vst.msk [vmem:[#allocation4] sm:$0xf] %vm605_vm5, %v604_v41 }
 0x41c   : > { %v720_v44 = vpop.f32.mrb[8].mxu1 }
 0x41d   : > { %v727_v45 = vmul.f32 %v1443_v43, %v720_v44  ;;  %v1292_v46 = vpop.f32.mrb[9].mxu1 }
 0x41e   : > { %v723_v47 = vpop.f32.mrb[10].mxu1 }
 0x41f   : > { %v1226_v48 = vpack.c.bf16 %v727_v45, %v727_v45  ;;  %v1293_v49 = vpop.f32.mrb[11].mxu1 }
 0x421   : > { %732 = vrot.lane.b32.xlu1 %v1226_v48, %s1633_s10 }
 0x424   : > { %v849_v51 = vpop.f32.mrb[12].mxu1 }
 0x425   : > { %v856_v53 = vmul.f32 %v1445_v50, %v849_v51  ;;  %v1304_v54 = vpop.f32.mrb[13].mxu1 }
 0x426   : > { %v852_v55 = vpop.f32.mrb[14].mxu1 }
 0x427   : > { %v1227_v57 = vpack.c.bf16 %v856_v53, %v856_v53  ;;  %v1305_v58 = vpop.f32.mrb[15].mxu1 }
 0x429   : > { %861 = vrot.lane.b32.xlu0 %v1227_v57, %s1634_s8  ;;  %s1540_s8 = scalar_lea.vmem %s1539_s30, 256 }
 0x42a   : > { %p1542_p5 = scmp.lt.s32.totalorder %s1540_s8, %s1534_s18 }
 0x42c   : > { %v978_v60 = vpop.f32.mrb[16].mxu1  ;;  %p1543_p9 = por %p1542_p5, %p1541_p3 }
 0x42d   : > { %v985_v61 = vmul.f32 %v1447_v59, %v978_v60  ;;  %v1316_v62 = vpop.f32.mrb[17].mxu1 }
 0x42e   : > { %v981_v63 = vpop.f32.mrb[18].mxu1  ;;  %p1544_p11 = pnand %p1543_p9, %p1537_p10 }
 0x42f   : > { %v1228_v1 = vpack.c.bf16 %v985_v61, %v985_v61  ;;  %v1317_v2 = vpop.f32.mrb[19].mxu1 }
 0x431   : > { %990 = vrot.lane.b32.xlu1 %v1228_v1, %s1635_s9 }
 0x493   : > { %v733_v3 = vpop.permute.xlu1 %732 }
 0x494   : > { %736 = vst.msk [vmem:[#allocation4] sm:$0xf] %vm735_vm6, %v733_v3 }
 0x49b   : > { %v862_v4 = vpop.permute.xlu0 %861 }
 0x49c   : > { %865 = vst.msk [vmem:[#allocation4] sm:$0xf] %vm864_vm7, %v862_v4 }
 0x4a3   : > { %v991_v0 = vpop.permute.xlu1 %990 }
 0x4a4   : > { %994 = vst.msk [vmem:[#allocation4] sm:$0xf] %vm993_vm8, %v991_v0 }
 0x4ab   : > { %v995_v5 = vld [vmem:[#allocation4] sm:$0xf] }
 0x4ac   : > { %1323 = vmatmul.mubr.msk.bf16.vlgmr.msra.gmra.mrb[20].mxu0 %vm366_vm1, %v995_v5 }
 0x57f   : > { %v1056_v7 = vpop.f32.mrb[20].mxu0 }
 0x580   : > { %v1057_v8 = vadd.f32 %v1217_v6, %v1056_v7  ;;  %v1324_v9 = vpop.f32.mrb[21].mxu0 }
 0x581   : > { %v1059_v10 = vpop.f32.mrb[22].mxu0 }
 0x582   : > { %v1325_v11 = vpop.f32.mrb[23].mxu0  ;;  %1062 = vst.msk [vmem:[%s336_s24] sm:$0xff] %vm366_vm1, %v1057_v8 }
 0x583   : > { %1547 = shalt.err (!%p1544_p11)
}
 0x584   : > { %s1548_s21 = scalar_lea.hbm %s1968_s22, 128  ;;  %s1552_s13 = scalar_lea.hbm %s2025_s7, 256 }
 0x585   : > { %p1549_p0 = scmp.ne.s32.totalorder %s1968_s22, %s1548_s21  ;;  %p1553_p6 = scmp.lt.u32.totalorder %s1968_s22, %s2025_s7 }
 0x586   : > { %p1554_p7 = scmp.lt.u32.totalorder %s1552_s13, %s1548_s21  ;;  %p1556_p8 = scmp.lt.u32.totalorder %s1548_s21, %s1968_s22 }
 0x587   : > { %p1550_p4 = pnand %p1549_p0, %p2044_p2 }
 0x588   : > { %p1555_p12 = por %p1554_p7, %p1553_p6 }
 0x589   : > { %p1551_p13 = pneg %p1550_p4 }
 0x58a   : > { %p1557_p1 = por %p1556_p8, %p1555_p12 }
 0x58c   : > { %p1558_p10 = pnand %p1557_p1, %p1551_p13 }
 0x58e   : > { %1561 = shalt.err (!%p1558_p10)
}
 0x58f   : > { %1336 = dma.vmem_to_hbm [thread:$0]  (%p2044_p2), %s1970_s12, 128, %s1968_s22, %s1064_s27  }
 0x590 PF: > { %s2045_s24 = sld [smem:[#allocation15_spill]]  ;;  %s2046_s23 = sld [smem:[#allocation16_spill]] }
 0x591   : > { %p2048_p5 = scmp.ge.s32.totalorder %s1620_s29, 2 }
 0x596   : > { %s1090_s10 = sand.u32 1, %s2045_s24   ;;  %p2047_p3 = scmp.ne.s32.totalorder %s2046_s23, 0 }
 0x597   : > { %s1091_s18 = scalar_lea.sflag [#allocation7], %s1090_s10 }
 0x598   : > { %p1350_p9 = pnand %p2048_p5, %p2047_p3 }
 0x59a   : > { %1595 = dma.done.wait (!%p1350_p9), %s1091_s18, 128  }
 0x59b   : > { %1597 = vsyncadd (!%p1350_p9), %s1091_s18, 4294967168  ;;  %s24_s29 = sadd.s32 1, %s1620_s29   ;;  %s2049_s24 = smov %s1604_s25 }
 0x59c   : > { %p21_p11 = scmp.ge.s32.totalorder %s24_s29, 4   ;;  %s2050_s25 = smov %s1608_s26 }
 0x59d   : > { %s2051_s26 = smov %s1819_s19  ;;  %s2052_s27 = smov %s1616_s28 }
 0x59e   : > { %s2053_s28 = smov %s2055_s20  ;;  %23 = sbr.rel (!%p21_p11) target bundleno = 7 (0x7), region = 106 }
 0x5a5   :  { %1096 = vsyncpa [#allocation6], 1 }
 0x5a6   :  { %1098 = vsyncpa [#allocation6 + $0x1], 1 }
 0x5a7   :  { %1099 = vsyncpa [#allocation9], 1 }
 0x5a8   :  { %1100 = vsyncpa [#allocation7], 1 }
 0x5a9   :  { %1102 = vsyncpa [#allocation7 + $0x1], 1 }

</bundles_post_ra>
